<compile_context>
chip_gen: v5e
topology: v5e:2x2
jax: 0.10.0
libtpu: 0.0.40
codegen_flags: <defaults>
</compile_context>

<pallas_src>
import functools
import math

import jax
import jax.numpy as jnp
from jax import lax
from jax.experimental import pallas as pl
from jax.experimental.pallas import tpu as pltpu


# dot_general dimension numbers.
_NT = (((1,), (1,)), ((), ()))   # contract last(LHS) with last(RHS): A @ B.T (no transpose copy)
_NN = (((1,), (0,)), ((), ()))   # ordinary matmul A @ B


def _flash_kernel(xq_ref, xkv_ref, wq_ref, wk_ref, wv_ref,        # inputs
                  o_ref,                                          # output
                  q_sc, kc_sc, vc_sc, m_sc, l_sc, acc_sc,         # VMEM scratch
                  *, cache_kv: bool, seq_len: int, seq_pad: int):
    """One (q_tile, kv_tile) grid step of single-head flash attention."""
    qi = pl.program_id(0)
    ki = pl.program_id(1)

    slot = ki if cache_kv else 0

    def _project_kv():
        # K / V projections (f32 MXU), written into the bf16 cache.
        k = lax.dot_general(xkv_ref[...], wk_ref[...], _NT,
                            preferred_element_type=jnp.float32)
        v = lax.dot_general(xkv_ref[...], wv_ref[...], _NT,
                            preferred_element_type=jnp.float32)
        kc_sc[slot] = k.astype(kc_sc.dtype)
        vc_sc[slot] = v.astype(vc_sc.dtype)

    if cache_kv:
        # Project each kv tile exactly once (first q tile); later q tiles reuse
        # the bf16 cache.
        pl.when(qi == 0)(_project_kv)
    else:
        _project_kv()

    @pl.when(ki == 0)
    def _init():
        m_sc[...] = jnp.full_like(m_sc, -jnp.inf)
        l_sc[...] = jnp.zeros_like(l_sc)
        acc_sc[...] = jnp.zeros_like(acc_sc)
        # Q projection once per q tile; softmax scale already folded into Wq.
        q = lax.dot_general(xq_ref[...], wq_ref[...], _NT,
                            preferred_element_type=jnp.float32)
        q_sc[...] = q.astype(q_sc.dtype)          # bf16 MXU operand

    k = kc_sc[slot]                               # [tk, d]  bf16
    v = vc_sc[slot]                               # [tk, d]  bf16

    # scores = Q @ K^T as a contraction (bf16 operands, f32 accumulation).
    s = lax.dot_general(q_sc[...], k, _NT, preferred_element_type=jnp.float32)

    if seq_pad != seq_len:
        # Mask out zero-padded key rows (static Python branch; large-negative,
        # not -inf, so exp() underflows cleanly to 0).
        tk = s.shape[-1]
        key_idx = ki * tk + lax.broadcasted_iota(jnp.int32, s.shape, 1)
        s = jnp.where(key_idx < seq_len, s, -1e30)

    # Online (numerically stable) softmax update.
    m_prev = m_sc[...]
    m_new = jnp.maximum(m_prev, jnp.max(s, axis=-1, keepdims=True))
    alpha = jnp.exp(m_prev - m_new)
    p = jnp.exp(s - m_new)                        # f32 exp on the EUP
    l_sc[...] = alpha * l_sc[...] + jnp.sum(p, axis=-1, keepdims=True)
    acc_sc[...] = alpha * acc_sc[...] + lax.dot_general(
        p.astype(v.dtype), v, _NN, preferred_element_type=jnp.float32)
    m_sc[...] = m_new

    @pl.when(ki == pl.num_programs(1) - 1)
    def _finalize():
        # Exact divide: once per q tile, essentially free; keeps f32 parity.
        o_ref[...] = (acc_sc[...] / l_sc[...]).astype(o_ref.dtype)


def _attention_ref(x, w_query, w_key, w_value):
    """Pure-JAX reference mirroring the PyTorch forward (also the small-S fast path)."""
    q = x @ w_query.T
    k = x @ w_key.T
    v = x @ w_value.T
    scores = q @ k.T
    weights = jax.nn.softmax(scores / (k.shape[-1] ** 0.5), axis=-1)
    return weights @ v


def _round_up(x, m):
    return ((x + m - 1) // m) * m


def _pow2_tile(limit, cap):
    """Largest power-of-two tile (>= 8) not exceeding min(limit, cap)."""
    t = 8
    while t * 2 <= cap and t * 2 <= limit:
        t *= 2
    return t


def _vmem_capacity_bytes():
    """Per-generation VMEM capacity (v5e/v6e: 128 MiB, v7x: 64 MiB)."""
    try:
        info = pltpu.get_tpu_info()
        cap = getattr(info, "vmem_capacity_bytes", None)
        if cap:
            return int(cap)
    except Exception:
        pass
    return 64 << 20   # conservative (v7x-sized) fallback


def _estimate_vmem_bytes(tq, tk, s_pad, d_in_p, d_out_p, cache_kv):
    F32, BF16 = 4, 2
    n_kv = s_pad // tk
    slots = n_kv if cache_kv else 1
    dbl = 2                                                     # double buffering
    inputs = dbl * F32 * (tq * d_in_p + tk * d_in_p + 3 * d_out_p * d_in_p)
    output = dbl * F32 * (tq * d_out_p)
    scratch = (BF16 * tq * d_out_p                              # q tile
               + 2 * BF16 * slots * tk * d_out_p                # K/V cache
               + F32 * tq * d_out_p                             # accumulator
               + 2 * F32 * tq)                                  # m, l
    working = 4 * F32 * tq * tk                                 # score tile + exp temps
    return inputs + output + scratch + working


def self_attention(x, w_query, w_key, w_value, *, tq=None, tk=None,
                   use_pallas=None):
    """Single-head, unbatched self attention matching the PyTorch module.

    x:   [S, d_in]
    w_*: PyTorch nn.Linear layout [d_out, d_in] (bias=False)
    ->   [S, d_out]
    """
    S, d_in = x.shape
    d_out = w_query.shape[0]
    scale = 1.0 / (d_out ** 0.5)

    # Small-shape fast path: launch + per-grid-step overhead dominates at tiny S.
    if use_pallas is None:
        use_pallas = S > 64
    if not use_pallas:
        return _attention_ref(x, w_query, w_key, w_value)

    # Fold 1/sqrt(d_out) into Wq once (O(d_in*d_out), keeps PyTorch layout).
    wq = w_query.astype(jnp.float32) * scale

    # Lane-dense padding: last dims up to multiples of 128. Zero-padded weight
    # rows/cols contribute nothing; padded key rows are masked in-kernel.
    d_in_p = _round_up(d_in, 128)
    d_out_p = _round_up(d_out, 128)

    cap = _vmem_capacity_bytes()
    usable = min(int(cap * 0.85), 120 << 20)
    big_vmem = usable >= (96 << 20)                 # 128-MiB-class parts (v5e/v6e)

    s8 = _round_up(S, 8)
    tq = _pow2_tile(s8, 512 if big_vmem else 256) if tq is None else max(8, _round_up(tq, 8))
    tk = _pow2_tile(s8, 1024 if big_vmem else 512) if tk is None else max(8, _round_up(tk, 8))

    def _plan(tq_, tk_):
        s_pad_ = _round_up(S, math.lcm(tq_, tk_))
        cache_ = (2 * s_pad_ * d_out_p * 2) <= int(0.4 * usable)   # bf16 K+V cache
        return s_pad_, cache_

    s_pad, cache_kv = _plan(tq, tk)
    # Shrink tiles until the estimate fits the per-generation VMEM budget.
    while (_estimate_vmem_bytes(tq, tk, s_pad, d_in_p, d_out_p, cache_kv) > usable
           and max(tq, tk) > 128):
        if tk >= tq:
            tk = max(128, tk // 2)
        else:
            tq = max(128, tq // 2)
        s_pad, cache_kv = _plan(tq, tk)

    n_q, n_kv = s_pad // tq, s_pad // tk

    f32 = jnp.float32
    xp = jnp.pad(x.astype(f32), ((0, s_pad - S), (0, d_in_p - d_in)))
    wqp = jnp.pad(wq, ((0, d_out_p - d_out), (0, d_in_p - d_in)))
    wkp = jnp.pad(w_key.astype(f32), ((0, d_out_p - d_out), (0, d_in_p - d_in)))
    wvp = jnp.pad(w_value.astype(f32), ((0, d_out_p - d_out), (0, d_in_p - d_in)))

    # With the K/V cache, the kv view of x only needs a fresh tile while qi == 0;
    # afterwards the index map goes constant so Pallas skips the re-DMA
    # (removes the n_q-fold HBM re-read of x).
    if cache_kv:
        xkv_map = lambda qi, ki: (jnp.where(qi == 0, ki, 0), 0)
    else:
        xkv_map = lambda qi, ki: (ki, 0)

    n_slots = n_kv if cache_kv else 1
    grid_spec = pltpu.PrefetchScalarGridSpec(
        num_scalar_prefetch=0,
        grid=(n_q, n_kv),
        in_specs=[
            pl.BlockSpec((tq, d_in_p), lambda qi, ki: (qi, 0)),      # x (q rows)
            pl.BlockSpec((tk, d_in_p), xkv_map),                     # x (kv rows)
            # TODO(synk): pipeline_mode=pl.Buffered(1) here would single-buffer the
            # constant weight blocks (v7x VMEM win); omitted for version safety.
            pl.BlockSpec((d_out_p, d_in_p), lambda qi, ki: (0, 0)),  # Wq (scaled)
            pl.BlockSpec((d_out_p, d_in_p), lambda qi, ki: (0, 0)),  # Wk
            pl.BlockSpec((d_out_p, d_in_p), lambda qi, ki: (0, 0)),  # Wv
        ],
        out_specs=pl.BlockSpec((tq, d_out_p), lambda qi, ki: (qi, 0)),
        scratch_shapes=[
            pltpu.VMEM((tq, d_out_p), jnp.bfloat16),                 # projected Q tile
            pltpu.VMEM((n_slots, tk, d_out_p), jnp.bfloat16),        # K cache
            pltpu.VMEM((n_slots, tk, d_out_p), jnp.bfloat16),        # V cache
            pltpu.VMEM((tq, 1), jnp.float32),                        # running max m
            pltpu.VMEM((tq, 1), jnp.float32),                        # running sum l
            pltpu.VMEM((tq, d_out_p), jnp.float32),                  # output accumulator
        ],
    )

    est = _estimate_vmem_bytes(tq, tk, s_pad, d_in_p, d_out_p, cache_kv)
    vmem_limit = int(min(max(est + (8 << 20), 32 << 20), cap))

    kv_passes = 1 if cache_kv else n_q
    cost = pl.CostEstimate(
        flops=int(2 * s_pad * d_in_p * d_out_p * (1 + 2 * kv_passes)
                  + 4 * s_pad * s_pad * d_out_p),
        transcendentals=int(s_pad * s_pad + s_pad * n_kv),
        bytes_accessed=int(4 * (s_pad * d_in_p * (1 + kv_passes)
                                + 3 * d_out_p * d_in_p
                                + s_pad * d_out_p)),
    )

    # Cached mode: q axis must be sequential (the per-core K/V cache is filled
    # only at qi == 0).  parallel-vs-arbitrary is measured ~neutral on the
    # single-TensorCore v5e/v6e parts.  Uncached mode keeps q-axis parallelism.
    dims = ("arbitrary", "arbitrary") if cache_kv else ("parallel", "arbitrary")

    kernel = functools.partial(_flash_kernel, cache_kv=cache_kv,
                               seq_len=S, seq_pad=s_pad)
    out = pl.pallas_call(
        kernel,
        out_shape=jax.ShapeDtypeStruct((s_pad, d_out_p), x.dtype),
        grid_spec=grid_spec,
        compiler_params=pltpu.CompilerParams(
            dimension_semantics=dims,
            vmem_limit_bytes=vmem_limit,
        ),
        cost_estimate=cost,
    )(xp, xp, wqp, wkp, wvp)

    return out[:S, :d_out]


if __name__ == "__main__":
    def make(key, S, d_in, d_out):
        kx, kq, kk, kv = jax.random.split(key, 4)
        x = jax.random.normal(kx, (S, d_in), jnp.float32)
        wq = jax.random.normal(kq, (d_out, d_in), jnp.float32) * 0.1
        wk = jax.random.normal(kk, (d_out, d_in), jnp.float32) * 0.1
        wv = jax.random.normal(kv, (d_out, d_in), jnp.float32) * 0.1
        return x, wq, wk, wv

    # 1) module-spec shape (seq=8, d_in=d_out=32): wrapper fast path (XLA) ...
    x, wq, wk, wv = make(jax.random.PRNGKey(0), 8, 32, 32)
    ref = _attention_ref(x, wq, wk, wv)
    out = jax.block_until_ready(self_attention(x, wq, wk, wv))
    assert out.shape == (8, 32)
    assert jnp.allclose(out, ref, atol=1e-5, rtol=1e-5), "mismatch (fast path)"

    # 1b) ... and the same shape forced through the Pallas kernel (pads d to 128).
    out_p = jax.block_until_ready(self_attention(x, wq, wk, wv, use_pallas=True))
    assert out_p.shape == (8, 32)
    assert jnp.allclose(out_p, ref, atol=2e-2, rtol=2e-2), "mismatch (pallas, spec shape)"

    # 2) multi-tile flash path: grid (4, 4) -> exercises online softmax across kv
    #    tiles and the K/V-cache reuse across q tiles (bf16 MXU operands).
    x2, wq2, wk2, wv2 = make(jax.random.PRNGKey(1), 512, 64, 128)
    out2 = jax.block_until_ready(self_attention(x2, wq2, wk2, wv2, tq=128, tk=128))
    ref2 = _attention_ref(x2, wq2, wk2, wv2)
    assert out2.shape == (512, 128)
    assert jnp.allclose(out2, ref2, atol=2e-2, rtol=2e-2), (
        "mismatch (tiled): max err %.3e" % float(jnp.max(jnp.abs(out2 - ref2))))

    # 3) ragged shape: S / d_in / d_out not multiples of tile sizes -> exercises
    #    the padding + padded-key masking path.
    x3, wq3, wk3, wv3 = make(jax.random.PRNGKey(2), 200, 48, 80)
    out3 = jax.block_until_ready(self_attention(x3, wq3, wk3, wv3))
    ref3 = _attention_ref(x3, wq3, wk3, wv3)
    assert out3.shape == (200, 80)
    assert jnp.allclose(out3, ref3, atol=2e-2, rtol=2e-2), (
        "mismatch (ragged): max err %.3e" % float(jnp.max(jnp.abs(out3 - ref3))))

    print("KERNEL_OK")
</pallas_src>

<mosaic_0001>
module attributes {stable_mosaic.version = 11 : i64} {
  func.func @_flash_kernel(%arg0: i32, %arg1: i32, %arg2: memref<8x128xf32, #tpu.memory_space<vmem>>, %arg3: memref<8x128xf32, #tpu.memory_space<vmem>>, %arg4: memref<128x128xf32, #tpu.memory_space<vmem>>, %arg5: memref<128x128xf32, #tpu.memory_space<vmem>>, %arg6: memref<128x128xf32, #tpu.memory_space<vmem>>, %arg7: memref<8x128xf32, #tpu.memory_space<vmem>>, %arg8: memref<8x128xbf16, #tpu.memory_space<vmem>>, %arg9: memref<1x8x128xbf16, #tpu.memory_space<vmem>>, %arg10: memref<1x8x128xbf16, #tpu.memory_space<vmem>>, %arg11: memref<8x1xf32, #tpu.memory_space<vmem>>, %arg12: memref<8x1xf32, #tpu.memory_space<vmem>>, %arg13: memref<8x128xf32, #tpu.memory_space<vmem>>) attributes {dimension_semantics = [#tpu.dimension_semantics<arbitrary>, #tpu.dimension_semantics<arbitrary>], iteration_bounds = array<i64: 1, 1>, scalar_prefetch = 0 : i64, scratch_operands = 6 : i64, tpu.core_type = #tpu.core_type<tc>, window_params = [{transform_indices = @transform_0, window_bounds = array<i64: 8, 128>}, {transform_indices = @transform_1, window_bounds = array<i64: 8, 128>}, {pipeline_mode = #tpu.pipeline_mode<synchronous>, transform_indices = @transform_2, window_bounds = array<i64: 128, 128>}, {pipeline_mode = #tpu.pipeline_mode<synchronous>, transform_indices = @transform_3, window_bounds = array<i64: 128, 128>}, {pipeline_mode = #tpu.pipeline_mode<synchronous>, transform_indices = @transform_4, window_bounds = array<i64: 128, 128>}, {transform_indices = @transform_5, window_bounds = array<i64: 8, 128>}]} {
    %c0_i32 = arith.constant 0 : i32
    %0 = arith.cmpi eq, %arg0, %c0_i32 : i32
    %1 = arith.extui %0 : i1 to i32
    %c0_i32_0 = arith.constant 0 : i32
    %2 = arith.cmpi ne, %1, %c0_i32_0 : i32
    scf.if %2 {
      %c0_25 = arith.constant 0 : index
      %c0_26 = arith.constant 0 : index
      %40 = vector.load %arg3[%c0_25, %c0_26] : memref<8x128xf32, #tpu.memory_space<vmem>>, vector<8x128xf32>
      %c0_27 = arith.constant 0 : index
      %c0_28 = arith.constant 0 : index
      %41 = vector.load %arg5[%c0_27, %c0_28] : memref<128x128xf32, #tpu.memory_space<vmem>>, vector<128x128xf32>
      %cst_29 = arith.constant dense<0.000000e+00> : vector<8x128xf32>
      %42 = tpu.matmul %40, %41, %cst_29 {dimension_numbers = #tpu.dot_dimension_numbers<[1], [1], [0], [0], [0, 0, 1, 0], [], []>} : vector<8x128xf32>, vector<128x128xf32>, vector<8x128xf32> -> vector<8x128xf32>
      %c0_30 = arith.constant 0 : index
      %c0_31 = arith.constant 0 : index
      %43 = vector.load %arg3[%c0_30, %c0_31] : memref<8x128xf32, #tpu.memory_space<vmem>>, vector<8x128xf32>
      %c0_32 = arith.constant 0 : index
      %c0_33 = arith.constant 0 : index
      %44 = vector.load %arg6[%c0_32, %c0_33] : memref<128x128xf32, #tpu.memory_space<vmem>>, vector<128x128xf32>
      %cst_34 = arith.constant dense<0.000000e+00> : vector<8x128xf32>
      %45 = tpu.matmul %43, %44, %cst_34 {dimension_numbers = #tpu.dot_dimension_numbers<[1], [1], [0], [0], [0, 0, 1, 0], [], []>} : vector<8x128xf32>, vector<128x128xf32>, vector<8x128xf32> -> vector<8x128xf32>
      %46 = arith.truncf %42 : vector<8x128xf32> to vector<8x128xbf16>
      %47 = arith.index_cast %arg1 : i32 to index
      %c0_35 = arith.constant 0 : index
      %c0_36 = arith.constant 0 : index
      %48 = vector.load %arg9[%47, %c0_35, %c0_36] : memref<1x8x128xbf16, #tpu.memory_space<vmem>>, vector<1x8x128xbf16>
      %49 = vector.shape_cast %48 : vector<1x8x128xbf16> to vector<8x128xbf16>
      %50 = vector.shape_cast %46 : vector<8x128xbf16> to vector<1x8x128xbf16>
      tpu.vector_store %arg9[%47, %c0_35, %c0_36], %50 {strides = array<i32>} : memref<1x8x128xbf16, #tpu.memory_space<vmem>>, vector<1x8x128xbf16>,
      %51 = arith.truncf %45 : vector<8x128xf32> to vector<8x128xbf16>
      %52 = arith.index_cast %arg1 : i32 to index
      %c0_37 = arith.constant 0 : index
      %c0_38 = arith.constant 0 : index
      %53 = vector.load %arg10[%52, %c0_37, %c0_38] : memref<1x8x128xbf16, #tpu.memory_space<vmem>>, vector<1x8x128xbf16>
      %54 = vector.shape_cast %53 : vector<1x8x128xbf16> to vector<8x128xbf16>
      %55 = vector.shape_cast %51 : vector<8x128xbf16> to vector<1x8x128xbf16>
      tpu.vector_store %arg10[%52, %c0_37, %c0_38], %55 {strides = array<i32>} : memref<1x8x128xbf16, #tpu.memory_space<vmem>>, vector<1x8x128xbf16>,
    } else {
    }
    %c0_i32_1 = arith.constant 0 : i32
    %3 = arith.cmpi eq, %arg1, %c0_i32_1 : i32
    %4 = arith.extui %3 : i1 to i32
    %c0_i32_2 = arith.constant 0 : i32
    %5 = arith.cmpi ne, %4, %c0_i32_2 : i32
    scf.if %5 {
      %cst_25 = arith.constant 0xFF800000 : f32
      %40 = vector.broadcast %cst_25 : f32 to vector<8x1xf32>
      %c0_26 = arith.constant 0 : index
      %c0_27 = arith.constant 0 : index
      %41 = vector.load %arg11[%c0_26, %c0_27] : memref<8x1xf32, #tpu.memory_space<vmem>>, vector<8x1xf32>
      tpu.vector_store %arg11[%c0_26, %c0_27], %40 {strides = array<i32>} : memref<8x1xf32, #tpu.memory_space<vmem>>, vector<8x1xf32>,
      %cst_28 = arith.constant 0.000000e+00 : f32
      %42 = vector.broadcast %cst_28 : f32 to vector<8x1xf32>
      %c0_29 = arith.constant 0 : index
      %c0_30 = arith.constant 0 : index
      %43 = vector.load %arg12[%c0_29, %c0_30] : memref<8x1xf32, #tpu.memory_space<vmem>>, vector<8x1xf32>
      tpu.vector_store %arg12[%c0_29, %c0_30], %42 {strides = array<i32>} : memref<8x1xf32, #tpu.memory_space<vmem>>, vector<8x1xf32>,
      %cst_31 = arith.constant 0.000000e+00 : f32
      %44 = vector.broadcast %cst_31 : f32 to vector<8x128xf32>
      %c0_32 = arith.constant 0 : index
      %c0_33 = arith.constant 0 : index
      %45 = vector.load %arg13[%c0_32, %c0_33] : memref<8x128xf32, #tpu.memory_space<vmem>>, vector<8x128xf32>
      tpu.vector_store %arg13[%c0_32, %c0_33], %44 {strides = array<i32>} : memref<8x128xf32, #tpu.memory_space<vmem>>, vector<8x128xf32>,
      %c0_34 = arith.constant 0 : index
      %c0_35 = arith.constant 0 : index
      %46 = vector.load %arg2[%c0_34, %c0_35] : memref<8x128xf32, #tpu.memory_space<vmem>>, vector<8x128xf32>
      %c0_36 = arith.constant 0 : index
      %c0_37 = arith.constant 0 : index
      %47 = vector.load %arg4[%c0_36, %c0_37] : memref<128x128xf32, #tpu.memory_space<vmem>>, vector<128x128xf32>
      %cst_38 = arith.constant dense<0.000000e+00> : vector<8x128xf32>
      %48 = tpu.matmul %46, %47, %cst_38 {dimension_numbers = #tpu.dot_dimension_numbers<[1], [1], [0], [0], [0, 0, 1, 0], [], []>} : vector<8x128xf32>, vector<128x128xf32>, vector<8x128xf32> -> vector<8x128xf32>
      %49 = arith.truncf %48 : vector<8x128xf32> to vector<8x128xbf16>
      %c0_39 = arith.constant 0 : index
      %c0_40 = arith.constant 0 : index
      %50 = vector.load %arg8[%c0_39, %c0_40] : memref<8x128xbf16, #tpu.memory_space<vmem>>, vector<8x128xbf16>
      tpu.vector_store %arg8[%c0_39, %c0_40], %49 {strides = array<i32>} : memref<8x128xbf16, #tpu.memory_space<vmem>>, vector<8x128xbf16>,
    } else {
    }
    %6 = arith.index_cast %arg1 : i32 to index
    %c0 = arith.constant 0 : index
    %c0_3 = arith.constant 0 : index
    %7 = vector.load %arg9[%6, %c0, %c0_3] : memref<1x8x128xbf16, #tpu.memory_space<vmem>>, vector<1x8x128xbf16>
    %8 = vector.shape_cast %7 : vector<1x8x128xbf16> to vector<8x128xbf16>
    %9 = arith.index_cast %arg1 : i32 to index
    %c0_4 = arith.constant 0 : index
    %c0_5 = arith.constant 0 : index
    %10 = vector.load %arg10[%9, %c0_4, %c0_5] : memref<1x8x128xbf16, #tpu.memory_space<vmem>>, vector<1x8x128xbf16>
    %11 = vector.shape_cast %10 : vector<1x8x128xbf16> to vector<8x128xbf16>
    %c0_6 = arith.constant 0 : index
    %c0_7 = arith.constant 0 : index
    %12 = vector.load %arg8[%c0_6, %c0_7] : memref<8x128xbf16, #tpu.memory_space<vmem>>, vector<8x128xbf16>
    %cst = arith.constant dense<0.000000e+00> : vector<8x8xf32>
    %13 = tpu.matmul %12, %8, %cst {dimension_numbers = #tpu.dot_dimension_numbers<[1], [1], [0], [0], [0, 0, 1, 0], [], []>} : vector<8x128xbf16>, vector<8x128xbf16>, vector<8x8xf32> -> vector<8x8xf32>
    %c0_8 = arith.constant 0 : index
    %c0_9 = arith.constant 0 : index
    %14 = vector.load %arg11[%c0_8, %c0_9] : memref<8x1xf32, #tpu.memory_space<vmem>>, vector<8x1xf32>
    %cst_10 = arith.constant dense<0xFF800000> : vector<8xf32>
    %15 = vector.multi_reduction <maximumf>, %13, %cst_10 [1] : vector<8x8xf32> to vector<8xf32>
    %16 = vector.shape_cast %15 : vector<8xf32> to vector<8x1xf32>
    %17 = arith.maximumf %14, %16 : vector<8x1xf32>
    %18 = arith.subf %14, %17 : vector<8x1xf32>
    %19 = math.exp %18 : vector<8x1xf32>
    %20 = vector.broadcast %17 : vector<8x1xf32> to vector<8x8xf32>
    %21 = arith.subf %13, %20 : vector<8x8xf32>
    %22 = math.exp %21 : vector<8x8xf32>
    %c0_11 = arith.constant 0 : index
    %c0_12 = arith.constant 0 : index
    %23 = vector.load %arg12[%c0_11, %c0_12] : memref<8x1xf32, #tpu.memory_space<vmem>>, vector<8x1xf32>
    %24 = arith.mulf %19, %23 : vector<8x1xf32>
    %cst_13 = arith.constant dense<0.000000e+00> : vector<8xf32>
    %25 = vector.multi_reduction <add>, %22, %cst_13 [1] : vector<8x8xf32> to vector<8xf32>
    %26 = vector.shape_cast %25 : vector<8xf32> to vector<8x1xf32>
    %27 = arith.addf %24, %26 : vector<8x1xf32>
    %c0_14 = arith.constant 0 : index
    %c0_15 = arith.constant 0 : index
    %28 = vector.load %arg12[%c0_14, %c0_15] : memref<8x1xf32, #tpu.memory_space<vmem>>, vector<8x1xf32>
    tpu.vector_store %arg12[%c0_14, %c0_15], %27 {strides = array<i32>} : memref<8x1xf32, #tpu.memory_space<vmem>>, vector<8x1xf32>,
    %c0_16 = arith.constant 0 : index
    %c0_17 = arith.constant 0 : index
    %29 = vector.load %arg13[%c0_16, %c0_17] : memref<8x128xf32, #tpu.memory_space<vmem>>, vector<8x128xf32>
    %30 = vector.broadcast %19 : vector<8x1xf32> to vector<8x128xf32>
    %31 = arith.mulf %30, %29 : vector<8x128xf32>
    %32 = arith.truncf %22 : vector<8x8xf32> to vector<8x8xbf16>
    %cst_18 = arith.constant dense<0.000000e+00> : vector<8x128xf32>
    %33 = tpu.matmul %32, %11, %cst_18 {dimension_numbers = #tpu.dot_dimension_numbers<[1], [0], [0], [1], [0, 0, 1, 1], [], []>} : vector<8x8xbf16>, vector<8x128xbf16>, vector<8x128xf32> -> vector<8x128xf32>
    %34 = arith.addf %31, %33 : vector<8x128xf32>
    %c0_19 = arith.constant 0 : index
    %c0_20 = arith.constant 0 : index
    %35 = vector.load %arg13[%c0_19, %c0_20] : memref<8x128xf32, #tpu.memory_space<vmem>>, vector<8x128xf32>
    tpu.vector_store %arg13[%c0_19, %c0_20], %34 {strides = array<i32>} : memref<8x128xf32, #tpu.memory_space<vmem>>, vector<8x128xf32>,
    %c0_21 = arith.constant 0 : index
    %c0_22 = arith.constant 0 : index
    %36 = vector.load %arg11[%c0_21, %c0_22] : memref<8x1xf32, #tpu.memory_space<vmem>>, vector<8x1xf32>
    tpu.vector_store %arg11[%c0_21, %c0_22], %17 {strides = array<i32>} : memref<8x1xf32, #tpu.memory_space<vmem>>, vector<8x1xf32>,
    %c0_i32_23 = arith.constant 0 : i32
    %37 = arith.cmpi eq, %arg1, %c0_i32_23 : i32
    %38 = arith.extui %37 : i1 to i32
    %c0_i32_24 = arith.constant 0 : i32
    %39 = arith.cmpi ne, %38, %c0_i32_24 : i32
    scf.if %39 {
      %c0_25 = arith.constant 0 : index
      %c0_26 = arith.constant 0 : index
      %40 = vector.load %arg13[%c0_25, %c0_26] : memref<8x128xf32, #tpu.memory_space<vmem>>, vector<8x128xf32>
      %c0_27 = arith.constant 0 : index
      %c0_28 = arith.constant 0 : index
      %41 = vector.load %arg12[%c0_27, %c0_28] : memref<8x1xf32, #tpu.memory_space<vmem>>, vector<8x1xf32>
      %42 = vector.broadcast %41 : vector<8x1xf32> to vector<8x128xf32>
      %43 = arith.divf %40, %42 : vector<8x128xf32>
      %c0_29 = arith.constant 0 : index
      %c0_30 = arith.constant 0 : index
      %44 = vector.load %arg7[%c0_29, %c0_30] : memref<8x128xf32, #tpu.memory_space<vmem>>, vector<8x128xf32>
      tpu.vector_store %arg7[%c0_29, %c0_30], %43 {strides = array<i32>} : memref<8x128xf32, #tpu.memory_space<vmem>>, vector<8x128xf32>,
    } else {
    }
    return
  }
  func.func @transform_0(%arg0: i32, %arg1: i32) -> (i32, i32) {
    %c0_i32 = arith.constant 0 : i32
    %c0_i32_0 = arith.constant 0 : i32
    return %arg0, %c0_i32 : i32, i32
  }
  func.func @transform_1(%arg0: i32, %arg1: i32) -> (i32, i32) {
    %c0_i32 = arith.constant 0 : i32
    %0 = arith.cmpi eq, %arg0, %c0_i32 : i32
    %c0_i32_0 = arith.constant 0 : i32
    %1 = arith.select %0, %arg1, %c0_i32_0 : i32
    %c0_i32_1 = arith.constant 0 : i32
    %c0_i32_2 = arith.constant 0 : i32
    return %1, %c0_i32_1 : i32, i32
  }
  func.func @transform_2(%arg0: i32, %arg1: i32) -> (i32, i32) {
    %c0_i32 = arith.constant 0 : i32
    %c0_i32_0 = arith.constant 0 : i32
    %c0_i32_1 = arith.constant 0 : i32
    return %c0_i32, %c0_i32_0 : i32, i32
  }
  func.func @transform_3(%arg0: i32, %arg1: i32) -> (i32, i32) {
    %c0_i32 = arith.constant 0 : i32
    %c0_i32_0 = arith.constant 0 : i32
    %c0_i32_1 = arith.constant 0 : i32
    return %c0_i32, %c0_i32_0 : i32, i32
  }
  func.func @transform_4(%arg0: i32, %arg1: i32) -> (i32, i32) {
    %c0_i32 = arith.constant 0 : i32
    %c0_i32_0 = arith.constant 0 : i32
    %c0_i32_1 = arith.constant 0 : i32
    return %c0_i32, %c0_i32_0 : i32, i32
  }
  func.func @transform_5(%arg0: i32, %arg1: i32) -> (i32, i32) {
    %c0_i32 = arith.constant 0 : i32
    %c0_i32_0 = arith.constant 0 : i32
    return %arg0, %c0_i32 : i32, i32
  }
}

</mosaic_0001>

<bundles_post_ra>
// kernel: tpu_custom_call.1
= control target key start
LH: loop header
LB: loop body
LE: loop exit
PB: predicated region body
PF: predicated region fallthrough
CT: control target
= control target key end

     0   :  { %10 = vsyncpa [#allocation9], 0  ;;  %s588_s0 = inlined_call_operand.hbm [shape: f32[8,128], index: 0, kind: input, shape index: {}]   ;;  %s589_s1 = inlined_call_operand.hbm [shape: f32[8,128], index: 1, kind: input, shape index: {}]   ;;  %s590_s2 = inlined_call_operand.hbm [shape: f32[128,128], index: 2, kind: input, shape index: {}]   ;;  %s591_s3 = inlined_call_operand.hbm [shape: f32[128,128], index: 3, kind: input, shape index: {}]   ;;  %s592_s4 = inlined_call_operand.hbm [shape: f32[128,128], index: 4, kind: input, shape index: {}]   ;;  %s593_s5 = inlined_call_operand.hbm [shape: f32[8,128], index: 5, kind: output, shape index: {}]  }
   0x1   :  { %11 = vsyncpa [#allocation12], 0 }
   0x2   :  { %12 = vsyncpa [#allocation15], 0  ;;  %s34_s20 = sshll.u32 %s589_s1, 4  ;;  %s35_s20 = int_to_ptr.hbm [resolvable:$true] %s34_s20 }
   0x3   :  { %13 = vsyncpa [#allocation10], 0  ;;  %s522_s21 = smov [#allocation11]   ;;  %s57_s25 = sshll.u32 %s591_s3, 4  ;;  %s58_s25 = int_to_ptr.hbm [resolvable:$true] %s57_s25 }
   0x4   :  { %s36_s22 = sshll.u32 %s522_s21, 4  ;;  %s523_s26 = smov [#allocation14]   ;;  %s37_s22 = int_to_ptr.vmem [resolvable:$true] %s36_s22 }
   0x5   :  { %39 = dma.hbm_to_vmem [thread:$0]  %s35_s20, 128, %s37_s22, [#allocation12]  }
   0x6   :  { %s59_s27 = sshll.u32 %s523_s26, 4  ;;  %s19_s30 = sshll.u32 %s588_s0, 4  ;;  %s60_s27 = int_to_ptr.vmem [resolvable:$true] %s59_s27  ;;  %s20_s30 = int_to_ptr.hbm [resolvable:$true] %s19_s30 }
   0x7   :  { %s524_s1 = smov 128   ;;  %s525_s6 = smov 8  }
   0x8   :  { %65 = dma.hbm_to_vmem [thread:$0]  %s58_s25, 2048, %s60_s27, [#allocation15], %s524_s1, %s524_s1, %s525_s6  }
   0x9   :  { %s44_s9 = sshll.u32 %s590_s2, 4  ;;  %s526_s10 = smov [#allocation8]   ;;  %s45_s9 = int_to_ptr.hbm [resolvable:$true] %s44_s9 }
   0xa   :  { %s21_s11 = sshll.u32 %s526_s10, 4  ;;  %s527_s3 = smov [#allocation13]   ;;  %s22_s11 = int_to_ptr.vmem [resolvable:$true] %s21_s11 }
   0xb   :  { %24 = dma.hbm_to_vmem [thread:$0]  %s20_s30, 128, %s22_s11, [#allocation9]  }
   0xc   :  { %s46_s12 = sshll.u32 %s527_s3, 4  ;;  %s70_s0 = sshll.u32 %s592_s4, 4  ;;  %s47_s12 = int_to_ptr.vmem [resolvable:$true] %s46_s12  ;;  %s71_s0 = int_to_ptr.hbm [resolvable:$true] %s70_s0 }
   0xd   :  { %52 = dma.hbm_to_vmem [thread:$0]  %s45_s9, 2048, %s47_s12, [#allocation12], %s524_s1, %s524_s1, %s525_s6  }
   0xe   :  { %s528_s15 = smov [#allocation16]  }
   0xf   :  { %s72_s16 = sshll.u32 %s528_s15, 4  ;;  %s73_s16 = int_to_ptr.vmem [resolvable:$true] %s72_s16 }
  0x10   :  { %78 = dma.hbm_to_vmem [thread:$0]  %s71_s0, 2048, %s73_s16, [#allocation15], %s524_s1, %s524_s1, %s525_s6  }
  0x11   :  { %514 = dma.done.wait [#allocation9], 128  }
  0x12   :  { %515 = vsyncadd [#allocation9], 4294967168 }
  0x13   :  { %516 = dma.done.wait [#allocation12], 2176  }
  0x14   :  { %517 = vsyncadd [#allocation12], 4294965120 }
  0x15   :  { %518 = dma.done.wait [#allocation15], 4096  }
  0x16   :  { %519 = vsyncadd [#allocation15], 4294963200  ;;  %v122_v0 = vld [vmem:[#allocation14 + $0x78] sm:$0xff]  ;;  %v121_v2 = vld [vmem:[#allocation14 + $0x70] sm:$0xff]  ;;  %vm247_vm0 = vcmask 64512   ;;  %vm187_vm1 = vcmask 7168  }
  0x17   :  { %v207_v1 = vld [vmem:[#allocation13 + $0x78] sm:$0xff]  ;;  %123 = vmatpush.xpose.msra.mxu0 %v122_v0  ;;  %v206_v3 = vld [vmem:[#allocation13 + $0x70] sm:$0xff]  ;;  %v120_v4 = vld [vmem:[#allocation14 + $0x68] sm:$0xff]  ;;  %v529_v52 = vmov -inf   ;;  %v530_v60 = vmov 0   ;;  %v531_v61 = vmov 0.0  }
  0x18   :  { %208 = vmatpush.xpose.msra.mxu2 %v207_v1  ;;  %v205_v5 = vld [vmem:[#allocation13 + $0x68] sm:$0xff]  ;;  %v119_v6 = vld [vmem:[#allocation14 + $0x60] sm:$0xff]  ;;  %v118_v8 = vld [vmem:[#allocation14 + $0x58] sm:$0xff]  ;;  %188 = vst.msk [vmem:[#allocation5] sm:$0xff] %vm187_vm1, %v529_v52  ;;  %361 = vset.pattern.permute.xlu0 %v530_v60  ;;  %vm282_vm2 = vcmask 1043456   ;;  %s532_s2 = smov [#allocation17]  }
  0x19   :  { %v204_v7 = vld [vmem:[#allocation13 + $0x60] sm:$0xff]  ;;  %v203_v9 = vld [vmem:[#allocation13 + $0x58] sm:$0xff]  ;;  %v117_v10 = vld [vmem:[#allocation14 + $0x50] sm:$0xff]  ;;  %363 = vset.pattern.permute.xlu2 %v530_v60  ;;  %362 = vset.pattern.permute.xlu1 %v530_v60  ;;  %189 = vst.msk [vmem:[#allocation6] sm:$0xff] %vm187_vm1, %v531_v61  ;;  %s333_s4 = sshll.u32 %s532_s2, 4  ;;  %s335_s19 = sshll.u32 %s593_s5, 4  ;;  %s334_s4 = int_to_ptr.vmem [resolvable:$true] %s333_s4  ;;  %s336_s19 = int_to_ptr.hbm [resolvable:$true] %s335_s19 }
  0x1a   :  { %v202_v11 = vld [vmem:[#allocation13 + $0x50] sm:$0xff]  ;;  %v116_v12 = vld [vmem:[#allocation14 + $0x48] sm:$0xff]  ;;  %v115_v14 = vld [vmem:[#allocation14 + $0x40] sm:$0xff] }
  0x1b   :  { %124 = vmatpush.xpose.msra.mxu0 %v121_v2  ;;  %v201_v13 = vld [vmem:[#allocation13 + $0x48] sm:$0xff]  ;;  %v200_v15 = vld [vmem:[#allocation13 + $0x40] sm:$0xff]  ;;  %v114_v16 = vld [vmem:[#allocation14 + $0x38] sm:$0xff] }
  0x1c   :  { %209 = vmatpush.xpose.msra.mxu2 %v206_v3  ;;  %v199_v17 = vld [vmem:[#allocation13 + $0x38] sm:$0xff]  ;;  %v113_v18 = vld [vmem:[#allocation14 + $0x30] sm:$0xff]  ;;  %v112_v20 = vld [vmem:[#allocation14 + $0x28] sm:$0xff] }
  0x1d   :  { %v198_v19 = vld [vmem:[#allocation13 + $0x30] sm:$0xff]  ;;  %v197_v21 = vld [vmem:[#allocation13 + $0x28] sm:$0xff]  ;;  %v111_v22 = vld [vmem:[#allocation14 + $0x20] sm:$0xff] }
  0x1e   :  { %v196_v23 = vld [vmem:[#allocation13 + $0x20] sm:$0xff]  ;;  %v110_v24 = vld [vmem:[#allocation14 + $0x18] sm:$0xff]  ;;  %v109_v26 = vld [vmem:[#allocation14 + $0x10] sm:$0xff] }
  0x1f   :  { %125 = vmatpush.xpose.msra.mxu0 %v120_v4  ;;  %v195_v25 = vld [vmem:[#allocation13 + $0x18] sm:$0xff]  ;;  %v194_v27 = vld [vmem:[#allocation13 + $0x10] sm:$0xff]  ;;  %v108_v28 = vld [vmem:[#allocation14 + $0x8] sm:$0xff] }
  0x20   :  { %210 = vmatpush.xpose.msra.mxu2 %v205_v5  ;;  %v193_v29 = vld [vmem:[#allocation13 + $0x8] sm:$0xff]  ;;  %v107_v30 = vld [vmem:[#allocation14] sm:$0xff]  ;;  %v106_v32 = vld [vmem:[#allocation11] sm:$0xff] }
  0x21   :  { %v192_v31 = vld [vmem:[#allocation13] sm:$0xff]  ;;  %v191_v33 = vld [vmem:[#allocation8] sm:$0xff]  ;;  %v158_v40 = vld [vmem:[#allocation16 + $0x78] sm:$0xff] }
  0x22   :  { %159 = vmatpush.xpose.msra.mxu1 %v158_v40  ;;  %v157_v41 = vld [vmem:[#allocation16 + $0x70] sm:$0xff]  ;;  %v156_v42 = vld [vmem:[#allocation16 + $0x68] sm:$0xff]  ;;  %v155_v43 = vld [vmem:[#allocation16 + $0x60] sm:$0xff] }
  0x23   :  { %126 = vmatpush.xpose.msra.mxu0 %v119_v6  ;;  %v154_v44 = vld [vmem:[#allocation16 + $0x58] sm:$0xff]  ;;  %v153_v45 = vld [vmem:[#allocation16 + $0x50] sm:$0xff]  ;;  %v152_v46 = vld [vmem:[#allocation16 + $0x48] sm:$0xff] }
  0x24   :  { %211 = vmatpush.xpose.msra.mxu2 %v204_v7  ;;  %v151_v49 = vld [vmem:[#allocation16 + $0x40] sm:$0xff]  ;;  %v150_v50 = vld [vmem:[#allocation16 + $0x38] sm:$0xff]  ;;  %v149_v53 = vld [vmem:[#allocation16 + $0x30] sm:$0xff] }
  0x25   :  { %v148_v54 = vld [vmem:[#allocation16 + $0x28] sm:$0xff]  ;;  %v147_v55 = vld [vmem:[#allocation16 + $0x20] sm:$0xff]  ;;  %v146_v56 = vld [vmem:[#allocation16 + $0x18] sm:$0xff] }
  0x26   :  { %160 = vmatpush.xpose.msra.mxu1 %v157_v41  ;;  %v145_v57 = vld [vmem:[#allocation16 + $0x10] sm:$0xff]  ;;  %v144_v58 = vld [vmem:[#allocation16 + $0x8] sm:$0xff]  ;;  %v143_v59 = vld [vmem:[#allocation16] sm:$0xff] }
  0x27   :  { %127 = vmatpush.xpose.msra.mxu0 %v118_v8  ;;  %v246_v62 = vld [vmem:[#allocation5] sm:$0xff] }
  0x28   :  { %212 = vmatpush.xpose.msra.mxu2 %v203_v9 }
  0x2a   :  { %161 = vmatpush.xpose.msra.mxu1 %v156_v42 }
  0x2b   :  { %128 = vmatpush.xpose.msra.mxu0 %v117_v10 }
  0x2c   :  { %213 = vmatpush.xpose.msra.mxu2 %v202_v11 }
  0x2e   :  { %162 = vmatpush.xpose.msra.mxu1 %v155_v43 }
  0x2f   :  { %129 = vmatpush.xpose.msra.mxu0 %v116_v12 }
  0x30   :  { %214 = vmatpush.xpose.msra.mxu2 %v201_v13 }
  0x32   :  { %163 = vmatpush.xpose.msra.mxu1 %v154_v44 }
  0x33   :  { %130 = vmatpush.xpose.msra.mxu0 %v115_v14  ;;  %v263_v14 = vld [vmem:[#allocation6] sm:$0xff] }
  0x34   :  { %215 = vmatpush.xpose.msra.mxu2 %v200_v15 }
  0x36   :  { %164 = vmatpush.xpose.msra.mxu1 %v153_v45 }
  0x37   :  { %131 = vmatpush.xpose.msra.mxu0 %v114_v16 }
  0x38   :  { %216 = vmatpush.xpose.msra.mxu2 %v199_v17 }
  0x3a   :  { %165 = vmatpush.xpose.msra.mxu1 %v152_v46 }
  0x3b   :  { %132 = vmatpush.xpose.msra.mxu0 %v113_v18 }
  0x3c   :  { %217 = vmatpush.xpose.msra.mxu2 %v198_v19 }
  0x3e   :  { %166 = vmatpush.xpose.msra.mxu1 %v151_v49 }
  0x3f   :  { %133 = vmatpush.xpose.msra.mxu0 %v112_v20 }
  0x40   :  { %218 = vmatpush.xpose.msra.mxu2 %v197_v21 }
  0x42   :  { %167 = vmatpush.xpose.msra.mxu1 %v150_v50 }
  0x43   :  { %134 = vmatpush.xpose.msra.mxu0 %v111_v22 }
  0x44   :  { %219 = vmatpush.xpose.msra.mxu2 %v196_v23 }
  0x46   :  { %168 = vmatpush.xpose.msra.mxu1 %v149_v53 }
  0x47   :  { %135 = vmatpush.xpose.msra.mxu0 %v110_v24 }
  0x48   :  { %220 = vmatpush.xpose.msra.mxu2 %v195_v25 }
  0x4a   :  { %169 = vmatpush.xpose.msra.mxu1 %v148_v54 }
  0x4b   :  { %136 = vmatpush.xpose.msra.mxu0 %v109_v26 }
  0x4c   :  { %221 = vmatpush.xpose.msra.mxu2 %v194_v27 }
  0x4e   :  { %170 = vmatpush.xpose.msra.mxu1 %v147_v55 }
  0x4f   :  { %137 = vmatpush.xpose.msra.mxu0 %v108_v28 }
  0x50   :  { %222 = vmatpush.xpose.msra.mxu2 %v193_v29 }
  0x52   :  { %171 = vmatpush.xpose.msra.mxu1 %v146_v56 }
  0x53   :  { %138 = vmatpush.xpose.msra.mxu0 %v107_v30 }
  0x54   :  { %223 = vmatpush.xpose.msra.mxu2 %v192_v31 }
  0x56   :  { %139 = vmatmul.f32.vlgmr.msra.gmra.mxu0 %v106_v32  ;;  %172 = vmatpush.xpose.msra.mxu1 %v145_v57 }
  0x57   :  { %224 = vmatmul.f32.vlgmr.msra.gmra.mxu2 %v191_v33 }
  0x5a   :  { %173 = vmatpush.xpose.msra.mxu1 %v144_v58 }
  0x5e   :  { %174 = vmatpush.xpose.msra.mxu1 %v143_v59 }
  0x61   :  { %175 = vmatmul.f32.vlgmr.msra.gmra.mxu1 %v106_v32 }
  0xd3   :  { %v140_v34 = vpop.f32.mrf.mxu0 }
  0xd4   :  { %v179_v35 = vpack.c.bf16 %v140_v34, %v140_v34 }
  0xd6   :  { %180 = vst [vmem:[#allocation3] sm:$0xf] %v179_v35 }
  0xda   :  { %v225_v36 = vpop.f32.mrf.mxu2 }
  0xdb   :  { %v228_v37 = vpack.c.bf16 %v225_v36, %v225_v36 }
  0xdd   :  { %229 = vst [vmem:[#allocation2] sm:$0xf] %v228_v37  ;;  %v230_v38 = vld [vmem:[#allocation3] sm:$0xf] }
  0xde   :  { %240 = vmatpush.bf16.xpose.msra.mxu3 %v230_v38  ;;  %v176_v4 = vpop.f32.mrf.mxu1 }
  0xdf   :  { %v181_v5 = vpack.c.bf16 %v176_v4, %v176_v4 }
  0xe1   :  { %182 = vst [vmem:[#allocation4] sm:$0xf] %v181_v5 }
  0xe4   :  { %v232_v39 = vld [vmem:[#allocation2] sm:$0xf] }
  0xe5   :  { %241 = vmatmul.bf16.vlgmr.msra.gmra.mxu3 %v232_v39 }
  0xe8   :  { %v231_v6 = vld [vmem:[#allocation4] sm:$0xf] }
  0xe9   :  { %v284_v7 = vsel %vm282_vm2, %v231_v6, 0 }
  0xea   :  { %293 = vmatpush.bf16.msrb.mxu3 %v284_v7 }
 0x168   :  { %v242_v47 = vpop.f32.mrf.mxu3 }
 0x169   :  { %v248_v48 = vsel %vm247_vm0, %v242_v47, -inf }
 0x16a   :  { %249 = vmax.xlane.f32.xlu0 %v248_v48 }
 0x170   :  { %v244_v51 = vpop.f32.mrf.mxu3 }
 0x1dd   :  { %v250_v63 = vpop.xlane.xlu0 %249 }
 0x1de   :  { %v251_v0 = vmax.f32 %v246_v62, %v250_v63 }
 0x1e0   :  { %v252_v1 = vsub.f32 %v246_v62, %v251_v0  ;;  %301 = vst.msk [vmem:[#allocation5] sm:$0xff] %vm187_vm1, %v251_v0  ;;  %257 = vperm.xlu0 %361, %v251_v0  }
 0x1e2   :  { %v253_v2 = vmul.f32 1.442695, %v252_v1 }
 0x1e4   :  { %364 = vpow2.f32 %v253_v2 }
 0x1ea   :  { %v365_v3 = vpop.eup %364 }
 0x1eb   :  { %274 = vperm.xlu2 %363, %v365_v3   ;;  %v264_v15 = vmul.f32 %v365_v3, %v263_v14 }
 0x245   :  { %v275_v25 = vpop.permute.xlu2 %274 }
 0x246   :  { %v277_v29 = vmul.f32 0.0, %v275_v25 }
 0x252   :  { %v258_v8 = vpop.permute.xlu0 %257 }
 0x253   :  { %v260_v9 = vsub.f32 %v242_v47, %v258_v8 }
 0x255   :  { %v261_v10 = vmul.f32 1.442695, %v260_v9 }
 0x257   :  { %366 = vpow2.f32 %v261_v10 }
 0x25d   :  { %v367_v11 = vpop.eup %366 }
 0x25e   :  { %v265_v12 = vsel %vm247_vm0, %v367_v11, 0.0  ;;  %v278_v13 = vpack.c.bf16 %v367_v11, %v367_v11 }
 0x25f   :  { %266 = vadd.xlane.f32.xlu1 %v265_v12 }
 0x260   :  { %349 = vmatmul.msk.bf16.vlgmr.msrb.gmra.mxu3 %vm247_vm0, %v278_v13 }
 0x2d2   :  { %v267_v16 = vpop.xlane.xlu1 %266 }
 0x2d3   :  { %v268_v17 = vadd.f32 %v267_v16, %v264_v15 }
 0x2d5   :  { %270 = vst.msk [vmem:[#allocation6] sm:$0xff] %vm187_vm1, %v268_v17 }
 0x2dc   :  { %v306_v18 = vld [vmem:[#allocation6] sm:$0xff] }
 0x2dd   :  { %309 = vperm.xlu1 %362, %v306_v18  }
 0x2e3   :  { %v295_v19 = vpop.f32.mrf.mxu3 }
 0x2e4   :  { %v299_v32 = vadd.f32 %v295_v19, %v277_v29 }
 0x2eb   :  { %v297_v20 = vpop.f32.mrf.mxu3 }
 0x34f   :  { %v310_v21 = vpop.permute.xlu1 %309 }
 0x350   :  { %368 = vrcp.f32 %v310_v21  ;;  %v323_v26 = vand.u32 2147483648, %v310_v21  ;;  %v321_v28 = vand.u32 2147483647, %v310_v21  ;;  %vm317_vm4 = vweird.f32 %v310_v21 }
 0x352   :  { %v324_v31 = vor.u32 1.1754944e-38, %v323_v26  ;;  %vm322_vm6 = vcmp.eq.f32.partialorder %v321_v28, 8.507059e+37 }
 0x356   :  { %v369_v22 = vpop.eup %368 }
 0x357   :  { %v313_v23 = vmul.f32 %v369_v22, %v310_v21  ;;  %vm318_vm3 = vweird.f32 %v369_v22 }
 0x358   :  { %vm319_vm5 = vmor %vm317_vm4, %vm318_vm3 }
 0x359   :  { %v314_v24 = vsub.f32 1.0, %v313_v23 }
 0x35b   :  { %v315_v27 = vmul.f32 %v369_v22, %v314_v24 }
 0x35d   :  { %v316_v30 = vadd.f32 %v369_v22, %v315_v27 }
 0x35f   :  { %v320_v33 = vsel %vm319_vm5, %v369_v22, %v316_v30 }
 0x360   :  { %v325_v34 = vsel %vm322_vm6, %v324_v31, %v320_v33 }
 0x361   :  { %v326_v35 = vmul.f32 %v325_v34, %v299_v32 }
 0x363   :  { %327 = vst [vmem:[#allocation17] sm:$0xff] %v326_v35 }
 0x364   :  { %338 = dma.vmem_to_hbm [thread:$0]  %s334_s4, 128, %s336_s19, [#allocation10]  }
 0x365   :  { %520 = dma.done.wait [#allocation10], 128  }
 0x366   :  { %521 = vsyncadd [#allocation10], 4294967168 }
 0x367   :  { %343 = vsyncpa [#allocation9], 1 }
 0x368   :  { %344 = vsyncpa [#allocation12], 1 }
 0x369   :  { %345 = vsyncpa [#allocation15], 1 }
 0x36a   :  { %346 = vsyncpa [#allocation10], 1 }

</bundles_post_ra>
